<compile_context>
chip_gen: v5e
topology: v5e:2x2
jax: 0.10.0
libtpu: 0.0.40
codegen_flags: <defaults>
</compile_context>

<pallas_src>
import functools

import jax
import jax.numpy as jnp
from jax import lax
from jax.experimental import pallas as pl
from jax.experimental.pallas import tpu as pltpu


def _lora_kernel(x_ref, w_ref, bias_ref, a_ref, b_ref, o_ref, acc_ref, xa_ref,
                 *, scaling):
    """One (i, j, k) grid step of fused base-linear + LoRA."""
    j = pl.program_id(1)
    k = pl.program_id(2)

    @pl.when(k == 0)
    def _init():
        # Fold the bias into the accumulator init (epilogue does one add fewer).
        acc_ref[...] = jnp.broadcast_to(
            bias_ref[...].astype(jnp.float32), acc_ref.shape)

    x = x_ref[...]                                  # [tm, tk]
    contract_k = (((1,), (1,)), ((), ()))           # contract last axis of both

    # Base path partial sum: x[tm, tk] . W[tn, tk] -> [tm, tn]
    acc_ref[...] += lax.dot_general(x, w_ref[...], contract_k,
                                    preferred_element_type=jnp.float32)

    # x @ A^T is independent of the N (j) axis: compute it only during the
    # j==0 pass over k; the persistent scratch is reused by every j>0 epilogue.
    @pl.when(j == 0)
    def _lora_xa():
        @pl.when(k == 0)
        def _():
            xa_ref[...] = jnp.zeros_like(xa_ref)
        xa_ref[...] += lax.dot_general(x, a_ref[...], contract_k,
                                       preferred_element_type=jnp.float32)

    @pl.when(k == pl.num_programs(2) - 1)
    def _finalize():
        # TODO(synk): dropout_p > 0 would need pltpu.prng_* masking of xa here;
        # the module default p=0.0 is a no-op.
        # Scale on the small [tm, R] tensor, then the rank-sized epilogue matmul.
        lora = lax.dot_general(xa_ref[...] * scaling,
                               b_ref[...].astype(jnp.float32), contract_k,
                               preferred_element_type=jnp.float32)   # [tm, tn]
        o_ref[...] = (acc_ref[...] + lora).astype(o_ref.dtype)


def _round_up(x, m):
    return ((x + m - 1) // m) * m


def _pick_tile(dim, target, align):
    """Full-extent (rounded to `align`) when small, else the aligned target."""
    return min(_round_up(dim, align), _round_up(target, align))


def lora_forward(x, w_base, b_base, lora_a, lora_b, *, rank, scaling=1.0,
                 tm_target=512, tn_target=512, tk_target=1024,
                 compute_dtype=jnp.bfloat16):
    """Apply LoRA-adapted linear layer.

    x:       [..., in_features]
    w_base:  [out_features, in_features]   (PyTorch nn.Linear weight layout)
    b_base:  [out_features]
    lora_a:  [rank, in_features]
    lora_b:  [out_features, rank]
    """
    orig_shape = x.shape
    in_features = orig_shape[-1]
    out_features = w_base.shape[0]
    x2d = x.reshape(-1, in_features)
    tokens = x2d.shape[0]
    eff_scaling = float(scaling) / float(rank)
    out_dtype = x.dtype

    # (8,128)-aligned tile sizes.
    tm = _pick_tile(tokens, tm_target, 8)
    tn = _pick_tile(out_features, tn_target, 128)
    tk = _pick_tile(in_features, tk_target, 128)

    mp = _round_up(tokens, tm)
    np_ = _round_up(out_features, tn)
    kp = _round_up(in_features, tk)

    # Cast to the MXU compute dtype (f32 accumulation happens in-kernel).
    x2d = x2d.astype(compute_dtype)
    w = w_base.astype(compute_dtype)
    a = lora_a.astype(compute_dtype)
    b_lo = lora_b.astype(compute_dtype)
    bias = b_base.reshape(1, out_features).astype(jnp.float32)

    # Zero-pad to tile multiples only when needed (zeros contribute nothing to
    # the dot products; padded rows/cols are sliced off).  For production use
    # pre-padded / pre-cast weights so this is never hit in the hot path.
    if mp != tokens or kp != in_features:
        x2d = jnp.pad(x2d, ((0, mp - tokens), (0, kp - in_features)))
    if np_ != out_features or kp != in_features:
        w = jnp.pad(w, ((0, np_ - out_features), (0, kp - in_features)))
    if kp != in_features:
        a = jnp.pad(a, ((0, 0), (0, kp - in_features)))
    if np_ != out_features:
        b_lo = jnp.pad(b_lo, ((0, np_ - out_features), (0, 0)))
        bias = jnp.pad(bias, ((0, 0), (0, np_ - out_features)))

    grid = (mp // tm, np_ // tn, kp // tk)

    flops = (2 * tokens * in_features * out_features      # base matmul
             + 2 * tokens * in_features * rank            # x @ A^T (once per i)
             + 2 * tokens * rank * out_features)          # xa @ B^T
    bytes_accessed = sum(int(arr.size) * arr.dtype.itemsize
                         for arr in (x2d, w, bias, a, b_lo)) \
        + mp * np_ * jnp.dtype(out_dtype).itemsize

    kernel = functools.partial(_lora_kernel, scaling=eff_scaling)

    out = pl.pallas_call(
        kernel,
        out_shape=jax.ShapeDtypeStruct((mp, np_), out_dtype),
        grid_spec=pltpu.PrefetchScalarGridSpec(
            num_scalar_prefetch=0,
            grid=grid,
            in_specs=[
                pl.BlockSpec((tm, tk), lambda i, j, k: (i, k)),       # x
                pl.BlockSpec((tn, tk), lambda i, j, k: (j, k)),       # W_base [OUT, IN]
                pl.BlockSpec((1, tn), lambda i, j, k: (0, j)),        # bias   [1, OUT]
                pl.BlockSpec((rank, tk), lambda i, j, k: (0, k)),     # lora_A [R, IN]
                pl.BlockSpec((tn, rank), lambda i, j, k: (j, 0)),     # lora_B [OUT, R]
            ],
            out_specs=pl.BlockSpec((tm, tn), lambda i, j, k: (i, j)),
            scratch_shapes=[
                pltpu.VMEM((tm, tn), jnp.float32),    # base accumulator (f32)
                pltpu.VMEM((tm, rank), jnp.float32),  # xa accumulator, reused across j
            ],
        ),
        compiler_params=pltpu.CompilerParams(
            # Only M may be megacore-sharded: j>0 tiles depend on the xa
            # scratch written during the j==0 pass, so j must stay on one core.
            dimension_semantics=("parallel", "arbitrary", "arbitrary"),
            vmem_limit_bytes=48 * 1024 * 1024,
        ),
        cost_estimate=pl.CostEstimate(
            flops=flops, transcendentals=0, bytes_accessed=bytes_accessed),
    )(x2d, w, bias, a, b_lo)

    out = out[:tokens, :out_features]
    return out.reshape(*orig_shape[:-1], out_features)


def lora_reference(x, w_base, b_base, lora_a, lora_b, *, rank, scaling=1.0):
    base = jnp.einsum("...i,oi->...o", x, w_base) + b_base
    lora = jnp.einsum("...r,or->...o",
                      jnp.einsum("...i,ri->...r", x, lora_a), lora_b)
    return base + lora * (scaling / rank)


def _make_inputs(key, batch, seq, in_features, out_features, rank):
    kx, kw, kb, ka, kB = jax.random.split(key, 5)
    x = jax.random.normal(kx, (batch, seq, in_features), dtype=jnp.float32)
    w_base = jax.random.normal(kw, (out_features, in_features), dtype=jnp.float32) * 0.1
    b_base = jax.random.normal(kb, (out_features,), dtype=jnp.float32) * 0.1
    # Module init is A ~ kaiming-uniform, B = zeros; use nonzero deterministic
    # values for both so the low-rank path is actually exercised.
    lora_a = jax.random.normal(ka, (rank, in_features), dtype=jnp.float32) * 0.1
    lora_b = jax.random.normal(kB, (out_features, rank), dtype=jnp.float32) * 0.1
    return x, w_base, b_base, lora_a, lora_b


if __name__ == "__main__":
    key = jax.random.PRNGKey(0)
    k1, k2, k3 = jax.random.split(key, 3)

    # --- Test 1: tiny shapes, single-block grid, f32 compute, tight tolerance. ---
    batch, seq, in_f, out_f, rank = 2, 8, 32, 32, 8
    x, w_base, b_base, lora_a, lora_b = _make_inputs(k1, batch, seq, in_f, out_f, rank)
    out = lora_forward(x, w_base, b_base, lora_a, lora_b, rank=rank, scaling=1.0,
                       compute_dtype=jnp.float32)
    out = jax.block_until_ready(out)
    ref = lora_reference(x, w_base, b_base, lora_a, lora_b, rank=rank, scaling=1.0)
    assert out.shape == (batch, seq, out_f)
    assert jnp.allclose(out, ref, atol=1e-4, rtol=1e-4), "mismatch vs reference (test 1)"

    # --- Test 2: small tiles forced so the full (M, N, K) grid is exercised:
    #     multiple i tiles (with M padding, tokens=20), multiple j tiles (so the
    #     j==0 xa hoist is reused by j>0), and k accumulation.  Grid (3, 3, 2). ---
    batch2, seq2, in2, out2, rank2 = 2, 10, 256, 384, 8
    x2, w2, bb2, la2, lb2 = _make_inputs(k2, batch2, seq2, in2, out2, rank2)
    out2_ = lora_forward(x2, w2, bb2, la2, lb2, rank=rank2, scaling=2.0,
                         tm_target=8, tn_target=128, tk_target=128,
                         compute_dtype=jnp.float32)
    out2_ = jax.block_until_ready(out2_)
    ref2 = lora_reference(x2, w2, bb2, la2, lb2, rank=rank2, scaling=2.0)
    assert out2_.shape == (batch2, seq2, out2)
    assert jnp.allclose(out2_, ref2, atol=1e-4, rtol=1e-4), "mismatch vs reference (test 2)"

    # --- Test 3: default (bf16 compute) path with default large-tile targets;
    #     compare against the reference evaluated on bf16-rounded inputs. ---
    batch3, seq3, in3, out3, rank3 = 2, 8, 256, 256, 8
    x3, w3, bb3, la3, lb3 = _make_inputs(k3, batch3, seq3, in3, out3, rank3)
    out3_ = lora_forward(x3, w3, bb3, la3, lb3, rank=rank3, scaling=1.0)
    out3_ = jax.block_until_ready(out3_)
    _bf = lambda t: t.astype(jnp.bfloat16).astype(jnp.float32)
    ref3 = lora_reference(_bf(x3), _bf(w3), bb3, _bf(la3), _bf(lb3),
                          rank=rank3, scaling=1.0)
    assert out3_.shape == (batch3, seq3, out3)
    assert jnp.allclose(out3_, ref3, atol=2e-2, rtol=2e-2), "mismatch vs reference (test 3)"

    print("KERNEL_OK")
</pallas_src>

<mosaic_0001>
module attributes {stable_mosaic.version = 11 : i64} {
  func.func @_lora_kernel(%arg0: i32, %arg1: i32, %arg2: i32, %arg3: memref<16x128xf32, #tpu.memory_space<vmem>>, %arg4: memref<128x128xf32, #tpu.memory_space<vmem>>, %arg5: memref<1x128xf32, #tpu.memory_space<vmem>>, %arg6: memref<8x128xf32, #tpu.memory_space<vmem>>, %arg7: memref<128x8xf32, #tpu.memory_space<vmem>>, %arg8: memref<16x128xf32, #tpu.memory_space<vmem>>, %arg9: memref<16x128xf32, #tpu.memory_space<vmem>>, %arg10: memref<16x8xf32, #tpu.memory_space<vmem>>) attributes {dimension_semantics = [#tpu.dimension_semantics<parallel>, #tpu.dimension_semantics<arbitrary>, #tpu.dimension_semantics<arbitrary>], iteration_bounds = array<i64: 1, 1, 1>, scalar_prefetch = 0 : i64, scratch_operands = 2 : i64, tpu.core_type = #tpu.core_type<tc>, window_params = [{transform_indices = @transform_0, window_bounds = array<i64: 16, 128>}, {transform_indices = @transform_1, window_bounds = array<i64: 128, 128>}, {transform_indices = @transform_2, window_bounds = array<i64: 1, 128>}, {transform_indices = @transform_3, window_bounds = array<i64: 8, 128>}, {transform_indices = @transform_4, window_bounds = array<i64: 128, 8>}, {transform_indices = @transform_5, window_bounds = array<i64: 16, 128>}]} {
    %c0_i32 = arith.constant 0 : i32
    %0 = arith.cmpi eq, %arg2, %c0_i32 : i32
    %1 = arith.extui %0 : i1 to i32
    %c0_i32_0 = arith.constant 0 : i32
    %2 = arith.cmpi ne, %1, %c0_i32_0 : i32
    scf.if %2 {
      %c0_12 = arith.constant 0 : index
      %c0_13 = arith.constant 0 : index
      %15 = vector.load %arg5[%c0_12, %c0_13] : memref<1x128xf32, #tpu.memory_space<vmem>>, vector<1x128xf32>
      %16 = vector.shape_cast %15 : vector<1x128xf32> to vector<1x128xf32>
      %17 = vector.broadcast %16 : vector<1x128xf32> to vector<16x128xf32>
      %c0_14 = arith.constant 0 : index
      %c0_15 = arith.constant 0 : index
      %18 = vector.load %arg9[%c0_14, %c0_15] : memref<16x128xf32, #tpu.memory_space<vmem>>, vector<16x128xf32>
      tpu.vector_store %arg9[%c0_14, %c0_15], %17 {strides = array<i32>} : memref<16x128xf32, #tpu.memory_space<vmem>>, vector<16x128xf32>,
    } else {
    }
    %c0 = arith.constant 0 : index
    %c0_1 = arith.constant 0 : index
    %3 = vector.load %arg3[%c0, %c0_1] : memref<16x128xf32, #tpu.memory_space<vmem>>, vector<16x128xf32>
    %c0_2 = arith.constant 0 : index
    %c0_3 = arith.constant 0 : index
    %4 = vector.load %arg9[%c0_2, %c0_3] : memref<16x128xf32, #tpu.memory_space<vmem>>, vector<16x128xf32>
    %c0_4 = arith.constant 0 : index
    %c0_5 = arith.constant 0 : index
    %5 = vector.load %arg4[%c0_4, %c0_5] : memref<128x128xf32, #tpu.memory_space<vmem>>, vector<128x128xf32>
    %cst = arith.constant dense<0.000000e+00> : vector<16x128xf32>
    %6 = tpu.matmul %3, %5, %cst {dimension_numbers = #tpu.dot_dimension_numbers<[1], [1], [0], [0], [0, 0, 1, 0], [], []>} : vector<16x128xf32>, vector<128x128xf32>, vector<16x128xf32> -> vector<16x128xf32>
    %7 = arith.addf %4, %6 : vector<16x128xf32>
    %c0_6 = arith.constant 0 : index
    %c0_7 = arith.constant 0 : index
    %8 = vector.load %arg9[%c0_6, %c0_7] : memref<16x128xf32, #tpu.memory_space<vmem>>, vector<16x128xf32>
    tpu.vector_store %arg9[%c0_6, %c0_7], %7 {strides = array<i32>} : memref<16x128xf32, #tpu.memory_space<vmem>>, vector<16x128xf32>,
    %c0_i32_8 = arith.constant 0 : i32
    %9 = arith.cmpi eq, %arg1, %c0_i32_8 : i32
    %10 = arith.extui %9 : i1 to i32
    %c0_i32_9 = arith.constant 0 : i32
    %11 = arith.cmpi ne, %10, %c0_i32_9 : i32
    scf.if %11 {
      %c0_i32_12 = arith.constant 0 : i32
      %15 = arith.cmpi eq, %arg2, %c0_i32_12 : i32
      %16 = arith.extui %15 : i1 to i32
      %c0_i32_13 = arith.constant 0 : i32
      %17 = arith.cmpi ne, %16, %c0_i32_13 : i32
      scf.if %17 {
        %cst_21 = arith.constant 0.000000e+00 : f32
        %23 = vector.broadcast %cst_21 : f32 to vector<16x8xf32>
        %c0_22 = arith.constant 0 : index
        %c0_23 = arith.constant 0 : index
        %24 = vector.load %arg10[%c0_22, %c0_23] : memref<16x8xf32, #tpu.memory_space<vmem>>, vector<16x8xf32>
        tpu.vector_store %arg10[%c0_22, %c0_23], %23 {strides = array<i32>} : memref<16x8xf32, #tpu.memory_space<vmem>>, vector<16x8xf32>,
      } else {
      }
      %c0_14 = arith.constant 0 : index
      %c0_15 = arith.constant 0 : index
      %18 = vector.load %arg10[%c0_14, %c0_15] : memref<16x8xf32, #tpu.memory_space<vmem>>, vector<16x8xf32>
      %c0_16 = arith.constant 0 : index
      %c0_17 = arith.constant 0 : index
      %19 = vector.load %arg6[%c0_16, %c0_17] : memref<8x128xf32, #tpu.memory_space<vmem>>, vector<8x128xf32>
      %cst_18 = arith.constant dense<0.000000e+00> : vector<16x8xf32>
      %20 = tpu.matmul %3, %19, %cst_18 {dimension_numbers = #tpu.dot_dimension_numbers<[1], [1], [0], [0], [0, 0, 1, 0], [], []>} : vector<16x128xf32>, vector<8x128xf32>, vector<16x8xf32> -> vector<16x8xf32>
      %21 = arith.addf %18, %20 : vector<16x8xf32>
      %c0_19 = arith.constant 0 : index
      %c0_20 = arith.constant 0 : index
      %22 = vector.load %arg10[%c0_19, %c0_20] : memref<16x8xf32, #tpu.memory_space<vmem>>, vector<16x8xf32>
      tpu.vector_store %arg10[%c0_19, %c0_20], %21 {strides = array<i32>} : memref<16x8xf32, #tpu.memory_space<vmem>>, vector<16x8xf32>,
    } else {
    }
    %c0_i32_10 = arith.constant 0 : i32
    %12 = arith.cmpi eq, %arg2, %c0_i32_10 : i32
    %13 = arith.extui %12 : i1 to i32
    %c0_i32_11 = arith.constant 0 : i32
    %14 = arith.cmpi ne, %13, %c0_i32_11 : i32
    scf.if %14 {
      %c0_12 = arith.constant 0 : index
      %c0_13 = arith.constant 0 : index
      %15 = vector.load %arg10[%c0_12, %c0_13] : memref<16x8xf32, #tpu.memory_space<vmem>>, vector<16x8xf32>
      %cst_14 = arith.constant 1.250000e-01 : f32
      %16 = vector.broadcast %cst_14 : f32 to vector<16x8xf32>
      %17 = arith.mulf %15, %16 : vector<16x8xf32>
      %c0_15 = arith.constant 0 : index
      %c0_16 = arith.constant 0 : index
      %18 = vector.load %arg7[%c0_15, %c0_16] : memref<128x8xf32, #tpu.memory_space<vmem>>, vector<128x8xf32>
      %cst_17 = arith.constant dense<0.000000e+00> : vector<16x128xf32>
      %19 = tpu.matmul %17, %18, %cst_17 {dimension_numbers = #tpu.dot_dimension_numbers<[1], [1], [0], [0], [0, 0, 1, 0], [], []>} : vector<16x8xf32>, vector<128x8xf32>, vector<16x128xf32> -> vector<16x128xf32>
      %c0_18 = arith.constant 0 : index
      %c0_19 = arith.constant 0 : index
      %20 = vector.load %arg9[%c0_18, %c0_19] : memref<16x128xf32, #tpu.memory_space<vmem>>, vector<16x128xf32>
      %21 = arith.addf %20, %19 : vector<16x128xf32>
      %c0_20 = arith.constant 0 : index
      %c0_21 = arith.constant 0 : index
      %22 = vector.load %arg8[%c0_20, %c0_21] : memref<16x128xf32, #tpu.memory_space<vmem>>, vector<16x128xf32>
      tpu.vector_store %arg8[%c0_20, %c0_21], %21 {strides = array<i32>} : memref<16x128xf32, #tpu.memory_space<vmem>>, vector<16x128xf32>,
    } else {
    }
    return
  }
  func.func @transform_0(%arg0: i32, %arg1: i32, %arg2: i32) -> (i32, i32) {
    %c0_i32 = arith.constant 0 : i32
    return %arg0, %arg2 : i32, i32
  }
  func.func @transform_1(%arg0: i32, %arg1: i32, %arg2: i32) -> (i32, i32) {
    %c0_i32 = arith.constant 0 : i32
    return %arg1, %arg2 : i32, i32
  }
  func.func @transform_2(%arg0: i32, %arg1: i32, %arg2: i32) -> (i32, i32) {
    %c0_i32 = arith.constant 0 : i32
    %c0_i32_0 = arith.constant 0 : i32
    return %c0_i32, %arg1 : i32, i32
  }
  func.func @transform_3(%arg0: i32, %arg1: i32, %arg2: i32) -> (i32, i32) {
    %c0_i32 = arith.constant 0 : i32
    %c0_i32_0 = arith.constant 0 : i32
    return %c0_i32, %arg2 : i32, i32
  }
  func.func @transform_4(%arg0: i32, %arg1: i32, %arg2: i32) -> (i32, i32) {
    %c0_i32 = arith.constant 0 : i32
    %c0_i32_0 = arith.constant 0 : i32
    return %arg1, %c0_i32 : i32, i32
  }
  func.func @transform_5(%arg0: i32, %arg1: i32, %arg2: i32) -> (i32, i32) {
    %c0_i32 = arith.constant 0 : i32
    return %arg0, %arg1 : i32, i32
  }
}

</mosaic_0001>

<bundles_post_ra>
// kernel: tpu_custom_call.1
= control target key start
LH: loop header
LB: loop body
LE: loop exit
PB: predicated region body
PF: predicated region fallthrough
CT: control target
= control target key end

     0   :  { %10 = vsyncpa [#allocation5], 0  ;;  %s564_s0 = inlined_call_operand.hbm [shape: f32[16,128], index: 0, kind: input, shape index: {}]   ;;  %s565_s1 = inlined_call_operand.vmem [shape: f32[128,128], index: 1, kind: input, shape index: {}]   ;;  %s566_s2 = inlined_call_operand.vmem [shape: f32[1,128], index: 2, kind: input, shape index: {}]   ;;  %s567_s3 = inlined_call_operand.vmem [shape: f32[8,128], index: 3, kind: input, shape index: {}]   ;;  %s568_s4 = inlined_call_operand.vmem [shape: f32[128,8], index: 4, kind: input, shape index: {}]   ;;  %s569_s5 = inlined_call_operand.hbm [shape: f32[16,128], index: 5, kind: output, shape index: {}]  }
   0x1   :  { %11 = vsyncpa [#allocation6], 0  ;;  %s16_s20 = sshll.u32 %s564_s0, 4  ;;  %s369_s21 = smov [#allocation4]   ;;  %s17_s20 = int_to_ptr.hbm [resolvable:$true] %s16_s20 }
   0x2   :  { %s18_s22 = sshll.u32 %s369_s21, 4  ;;  %s370_s23 = smov 128   ;;  %s19_s22 = int_to_ptr.vmem [resolvable:$true] %s18_s22 }
   0x3   :  { %s371_s24 = smov 8  }
   0x4   :  { %24 = dma.hbm_to_vmem [thread:$0]  %s17_s20, 256, %s19_s22, [#allocation5], %s370_s23, %s370_s23, %s371_s24  }
   0x5   :  { %365 = dma.done.wait [#allocation5], 256  }
   0x6   :  { %366 = vsyncadd [#allocation5], 4294967040  ;;  %vm101_vm0 = vcmask 64512   ;;  %v106_v0 = vld [vmem:[%s567_s3] sm:$0xff]  ;;  %v413_v1 = vld [vmem:[#allocation4] sm:$0xff]  ;;  %v372_v17 = vmov 0.0  }
   0x7   :  { %122 = vmatpush.xpose.msra.mxu1 %v106_v0  ;;  %v66_v2 = vld [vmem:[%s565_s1 + $0x78] sm:$0xff]  ;;  %v65_v4 = vld [vmem:[%s565_s1 + $0x70] sm:$0xff]  ;;  %v64_v6 = vld [vmem:[%s565_s1 + $0x68] sm:$0xff]  ;;  %102 = vst.msk [vmem:[#allocation3] sm:$0xff] %vm101_vm0, %v372_v17  ;;  %s373_s14 = smov [#allocation7]   ;;  %s248_s18 = sshll.u32 %s569_s5, 4  ;;  %s249_s18 = int_to_ptr.hbm [resolvable:$true] %s248_s18 }
   0x8   :  { %v157_v3 = vld [vmem:[%s568_s4 + $0x78] sm:$0xff]  ;;  %67 = vmatpush.xpose.msra.mxu0 %v66_v2  ;;  %v156_v5 = vld [vmem:[%s568_s4 + $0x70] sm:$0xff]  ;;  %279 = vmatpush.xpose.msra.mxu3 %v66_v2  ;;  %v155_v7 = vld [vmem:[%s568_s4 + $0x68] sm:$0xff]  ;;  %103 = vst.msk [vmem:[#allocation3 + $0x8] sm:$0xff] %vm101_vm0, %v372_v17  ;;  %s246_s15 = sshll.u32 %s373_s14, 4  ;;  %s247_s15 = int_to_ptr.vmem [resolvable:$true] %s246_s15 }
   0x9   :  { %295 = vmatpush.xpose.msk.msra.mxu2 %vm101_vm0, %v157_v3  ;;  %v438_v8 = vld [vmem:[#allocation4 + $0x8] sm:$0xff]  ;;  %v63_v9 = vld [vmem:[%s565_s1 + $0x60] sm:$0xff]  ;;  %v61_v13 = vld [vmem:[%s565_s1 + $0x50] sm:$0xff] }
   0xa   :  { %123 = vmatmul.f32.vlgmr.msra.gmra.mxu1 %v413_v1  ;;  %v154_v10 = vld [vmem:[%s568_s4 + $0x60] sm:$0xff]  ;;  %v62_v11 = vld [vmem:[%s565_s1 + $0x58] sm:$0xff]  ;;  %v152_v14 = vld [vmem:[%s568_s4 + $0x50] sm:$0xff] }
   0xb   :  { %261 = vmatpush.xpose.msk.msrb.mxu1 %vm101_vm0, %v157_v3  ;;  %v153_v12 = vld [vmem:[%s568_s4 + $0x58] sm:$0xff]  ;;  %v60_v15 = vld [vmem:[%s565_s1 + $0x48] sm:$0xff]  ;;  %v59_v18 = vld [vmem:[%s565_s1 + $0x40] sm:$0xff] }
   0xc   :  { %68 = vmatpush.xpose.msra.mxu0 %v65_v4  ;;  %280 = vmatpush.xpose.msra.mxu3 %v65_v4  ;;  %v151_v16 = vld [vmem:[%s568_s4 + $0x48] sm:$0xff]  ;;  %v150_v19 = vld [vmem:[%s568_s4 + $0x40] sm:$0xff]  ;;  %v58_v20 = vld [vmem:[%s565_s1 + $0x38] sm:$0xff] }
   0xd   :  { %296 = vmatpush.xpose.msk.msra.mxu2 %vm101_vm0, %v156_v5  ;;  %v149_v21 = vld [vmem:[%s568_s4 + $0x38] sm:$0xff]  ;;  %v57_v22 = vld [vmem:[%s565_s1 + $0x30] sm:$0xff]  ;;  %v56_v24 = vld [vmem:[%s565_s1 + $0x28] sm:$0xff] }
   0xe   :  { %v148_v23 = vld [vmem:[%s568_s4 + $0x30] sm:$0xff]  ;;  %v147_v25 = vld [vmem:[%s568_s4 + $0x28] sm:$0xff]  ;;  %v55_v26 = vld [vmem:[%s565_s1 + $0x20] sm:$0xff] }
   0xf   :  { %262 = vmatpush.xpose.msk.msrb.mxu1 %vm101_vm0, %v156_v5  ;;  %v146_v27 = vld [vmem:[%s568_s4 + $0x20] sm:$0xff]  ;;  %v54_v28 = vld [vmem:[%s565_s1 + $0x18] sm:$0xff]  ;;  %v53_v30 = vld [vmem:[%s565_s1 + $0x10] sm:$0xff] }
  0x10   :  { %69 = vmatpush.xpose.msra.mxu0 %v64_v6  ;;  %281 = vmatpush.xpose.msra.mxu3 %v64_v6  ;;  %v145_v29 = vld [vmem:[%s568_s4 + $0x18] sm:$0xff]  ;;  %v144_v31 = vld [vmem:[%s568_s4 + $0x10] sm:$0xff]  ;;  %v52_v32 = vld [vmem:[%s565_s1 + $0x8] sm:$0xff] }
  0x11   :  { %297 = vmatpush.xpose.msk.msra.mxu2 %vm101_vm0, %v155_v7  ;;  %v143_v33 = vld [vmem:[%s568_s4 + $0x8] sm:$0xff]  ;;  %v51_v34 = vld [vmem:[%s565_s1] sm:$0xff] }
  0x12   :  { %126 = vmatmul.f32.gmra.mxu1 %v438_v8  ;;  %v142_v35 = vld [vmem:[%s568_s4] sm:$0xff]  ;;  %v105_v39 = vld [vmem:[#allocation3 + $0x8] sm:$0xff] }
  0x13   :  { %263 = vmatpush.xpose.msk.msrb.mxu1 %vm101_vm0, %v155_v7  ;;  %v104_v36 = vld [vmem:[#allocation3] sm:$0xff] }
  0x14   :  { %70 = vmatpush.xpose.msra.mxu0 %v63_v9  ;;  %282 = vmatpush.xpose.msra.mxu3 %v63_v9  ;;  %v316_v46 = vld [vmem:[%s566_s2] ss:$0 sm:$0xff] }
  0x15   :  { %298 = vmatpush.xpose.msk.msra.mxu2 %vm101_vm0, %v154_v10 }
  0x17   :  { %264 = vmatpush.xpose.msk.msrb.mxu1 %vm101_vm0, %v154_v10 }
  0x18   :  { %71 = vmatpush.xpose.msra.mxu0 %v62_v11  ;;  %283 = vmatpush.xpose.msra.mxu3 %v62_v11 }
  0x19   :  { %299 = vmatpush.xpose.msk.msra.mxu2 %vm101_vm0, %v153_v12 }
  0x1b   :  { %265 = vmatpush.xpose.msk.msrb.mxu1 %vm101_vm0, %v153_v12 }
  0x1c   :  { %72 = vmatpush.xpose.msra.mxu0 %v61_v13  ;;  %284 = vmatpush.xpose.msra.mxu3 %v61_v13 }
  0x1d   :  { %300 = vmatpush.xpose.msk.msra.mxu2 %vm101_vm0, %v152_v14 }
  0x1f   :  { %266 = vmatpush.xpose.msk.msrb.mxu1 %vm101_vm0, %v152_v14 }
  0x20   :  { %73 = vmatpush.xpose.msra.mxu0 %v60_v15  ;;  %285 = vmatpush.xpose.msra.mxu3 %v60_v15 }
  0x21   :  { %301 = vmatpush.xpose.msk.msra.mxu2 %vm101_vm0, %v151_v16 }
  0x23   :  { %267 = vmatpush.xpose.msk.msrb.mxu1 %vm101_vm0, %v151_v16 }
  0x24   :  { %74 = vmatpush.xpose.msra.mxu0 %v59_v18  ;;  %286 = vmatpush.xpose.msra.mxu3 %v59_v18 }
  0x25   :  { %302 = vmatpush.xpose.msk.msra.mxu2 %vm101_vm0, %v150_v19 }
  0x27   :  { %268 = vmatpush.xpose.msk.msrb.mxu1 %vm101_vm0, %v150_v19 }
  0x28   :  { %75 = vmatpush.xpose.msra.mxu0 %v58_v20  ;;  %287 = vmatpush.xpose.msra.mxu3 %v58_v20 }
  0x29   :  { %303 = vmatpush.xpose.msk.msra.mxu2 %vm101_vm0, %v149_v21 }
  0x2b   :  { %269 = vmatpush.xpose.msk.msrb.mxu1 %vm101_vm0, %v149_v21 }
  0x2c   :  { %76 = vmatpush.xpose.msra.mxu0 %v57_v22  ;;  %288 = vmatpush.xpose.msra.mxu3 %v57_v22 }
  0x2d   :  { %304 = vmatpush.xpose.msk.msra.mxu2 %vm101_vm0, %v148_v23 }
  0x2f   :  { %270 = vmatpush.xpose.msk.msrb.mxu1 %vm101_vm0, %v148_v23 }
  0x30   :  { %77 = vmatpush.xpose.msra.mxu0 %v56_v24  ;;  %289 = vmatpush.xpose.msra.mxu3 %v56_v24 }
  0x31   :  { %305 = vmatpush.xpose.msk.msra.mxu2 %vm101_vm0, %v147_v25 }
  0x33   :  { %271 = vmatpush.xpose.msk.msrb.mxu1 %vm101_vm0, %v147_v25 }
  0x34   :  { %78 = vmatpush.xpose.msra.mxu0 %v55_v26  ;;  %290 = vmatpush.xpose.msra.mxu3 %v55_v26 }
  0x35   :  { %306 = vmatpush.xpose.msk.msra.mxu2 %vm101_vm0, %v146_v27 }
  0x37   :  { %272 = vmatpush.xpose.msk.msrb.mxu1 %vm101_vm0, %v146_v27 }
  0x38   :  { %79 = vmatpush.xpose.msra.mxu0 %v54_v28  ;;  %291 = vmatpush.xpose.msra.mxu3 %v54_v28 }
  0x39   :  { %307 = vmatpush.xpose.msk.msra.mxu2 %vm101_vm0, %v145_v29 }
  0x3b   :  { %273 = vmatpush.xpose.msk.msrb.mxu1 %vm101_vm0, %v145_v29 }
  0x3c   :  { %80 = vmatpush.xpose.msra.mxu0 %v53_v30  ;;  %292 = vmatpush.xpose.msra.mxu3 %v53_v30 }
  0x3d   :  { %308 = vmatpush.xpose.msk.msra.mxu2 %vm101_vm0, %v144_v31 }
  0x3f   :  { %274 = vmatpush.xpose.msk.msrb.mxu1 %vm101_vm0, %v144_v31 }
  0x40   :  { %81 = vmatpush.xpose.msra.mxu0 %v52_v32  ;;  %293 = vmatpush.xpose.msra.mxu3 %v52_v32 }
  0x41   :  { %309 = vmatpush.xpose.msk.msra.mxu2 %vm101_vm0, %v143_v33 }
  0x43   :  { %275 = vmatpush.xpose.msk.msrb.mxu1 %vm101_vm0, %v143_v33 }
  0x44   :  { %82 = vmatpush.xpose.msra.mxu0 %v51_v34  ;;  %294 = vmatpush.xpose.msra.mxu3 %v51_v34 }
  0x45   :  { %310 = vmatpush.xpose.msk.msra.mxu2 %vm101_vm0, %v142_v35 }
  0x47   :  { %276 = vmatpush.xpose.msk.msrb.mxu1 %vm101_vm0, %v142_v35  ;;  %83 = vmatmul.f32.vlgmr.msra.gmra.mxu0 %v413_v1 }
  0x48   :  { %86 = vmatmul.f32.vlgmr.msra.gmra.mxu3 %v438_v8 }
  0x87   :  { %v124_v37 = vpop.f32.mrf.mxu1 }
  0x88   :  { %v130_v38 = vadd.f32 %v124_v37, %v104_v36 }
  0x8a   :  { %133 = vst.msk [vmem:[#allocation3] sm:$0xff] %vm101_vm0, %v130_v38 }
  0x8f   :  { %v127_v40 = vpop.f32.mrf.mxu1 }
  0x90   :  { %v131_v41 = vadd.f32 %v127_v40, %v105_v39 }
  0x91   :  { %v138_v42 = vld [vmem:[#allocation3] sm:$0xff] }
  0x92   :  { %134 = vst.msk [vmem:[#allocation3 + $0x8] sm:$0xff] %vm101_vm0, %v131_v41  ;;  %v140_v43 = vmul.f32 0.125, %v138_v42 }
  0x94   :  { %277 = vmatmul.msk.f32.vlgmr.msrb.gmra.mxu1 %vm101_vm0, %v140_v43 }
  0x99   :  { %v139_v44 = vld [vmem:[#allocation3 + $0x8] sm:$0xff] }
  0x9a   :  { %v141_v45 = vmul.f32 0.125, %v139_v44 }
  0x9c   :  { %278 = vmatmul.msk.f32.vlgmr.msra.gmra.mxu2 %vm101_vm0, %v141_v45 }
  0xc4   :  { %v84_v47 = vpop.f32.mrf.mxu0 }
  0xc5   :  { %v90_v48 = vadd.f32 %v316_v46, %v84_v47 }
  0xcb   :  { %v87_v51 = vpop.f32.mrf.mxu3 }
  0xcc   :  { %v91_v52 = vadd.f32 %v316_v46, %v87_v51 }
 0x111   :  { %v230_v49 = vpop.f32.mrf.mxu1 }
 0x112   :  { %v238_v50 = vadd.f32 %v230_v49, %v90_v48 }
 0x114   :  { %240 = vst [vmem:[#allocation7] sm:$0xff] %v238_v50 }
 0x11f   :  { %v233_v53 = vpop.f32.mrf.mxu2 }
 0x120   :  { %v239_v54 = vadd.f32 %v233_v53, %v91_v52 }
 0x122   :  { %241 = vst [vmem:[#allocation7 + $0x8] sm:$0xff] %v239_v54 }
 0x123   :  { %254 = dma.vmem_to_hbm [thread:$0]  %s247_s15, 256, %s249_s18, [#allocation6], %s370_s23, %s370_s23, %s371_s24  }
 0x124   :  { %367 = dma.done.wait [#allocation6], 256  }
 0x125   :  { %368 = vsyncadd [#allocation6], 4294967040 }
 0x126   :  { %259 = vsyncpa [#allocation5], 1 }
 0x127   :  { %260 = vsyncpa [#allocation6], 1 }

</bundles_post_ra>
